<compile_context>
chip_gen: v7x
topology: tpu7x:2x2x1
jax: 0.10.0
libtpu: 0.0.40
codegen_flags: <defaults>
</compile_context>

<pallas_src>
import math
import jax
import jax.numpy as jnp
from jax.experimental import pallas as pl
from jax.experimental.pallas import tpu as pltpu


_VMEM_BUDGET = 32 * 1024 * 1024   # tile-derivation budget (fits every generation)
_VMEM_LIMIT = 48 * 1024 * 1024    # explicit scoped-VMEM limit (headroom < v7x 64 MiB)
_NEG_INF = -1e30                  # bias fill for padded class columns


def _round_up(x, m):
    return ((x + m - 1) // m) * m


def _select_tiles(n, c_pad, *, a_bytes=2, budget_bytes=_VMEM_BUDGET):
    """Pick (tile_m, tile_k) for the propagation from the VMEM budget.

    Footprint model per propagation pallas_call (bf16 A):
      A tile   : 2 * tm * tk * a_bytes   (double buffered)
      z tile   : 2 * tk * c_pad * 2      (double buffered, bf16)
      out tile : 2 * tm * c_pad * 4      (double buffered, worst case f32)
      acc      :     tm * c_pad * 4      (scratch)
    """
    best = (16, 128)
    for tm in (16, 32, 64, 128, 256, 512, 1024):
        for tk in (128, 256, 512, 1024, 2048):
            fp = (2 * tm * tk * a_bytes
                  + 2 * tk * c_pad * 2
                  + 3 * tm * c_pad * 4)
            if fp <= budget_bytes and tm * tk >= best[0] * best[1]:
                best = (tm, tk)
    tm, tk = best
    # Don't pad a small graph up to a huge tile.
    cap = max(int(pl.next_power_of_2(n)), 128)
    tk = min(tk, cap)
    tm = min(tm, cap)
    return tm, tk


# ----------------------------- kernels --------------------------------------

def _project_kernel(x_ref, w_ref, o_ref):
    # z_tile = x_tile @ W   (bf16 operands, f32 accumulation on the MXU)
    o_ref[...] = jnp.dot(x_ref[...], w_ref[...],
                         preferred_element_type=jnp.float32).astype(o_ref.dtype)


def _propagate_kernel(adj_ref, z_ref, o_ref, acc_ref):
    # out_tile = sum_k A[i, k] @ z[k]   (K-tiled, f32 accumulator scratch)
    @pl.when(pl.program_id(1) == 0)
    def _():
        acc_ref[...] = jnp.zeros_like(acc_ref)

    acc_ref[...] += jnp.dot(adj_ref[...], z_ref[...],
                            preferred_element_type=jnp.float32)

    @pl.when(pl.program_id(1) == pl.num_programs(1) - 1)
    def _():
        o_ref[...] = acc_ref[...].astype(o_ref.dtype)


def _propagate_lsm_kernel(adj_ref, z_ref, b_ref, o_ref, acc_ref):
    # Final propagation fused with bias add + numerically-stable log-softmax.
    @pl.when(pl.program_id(1) == 0)
    def _():
        acc_ref[...] = jnp.zeros_like(acc_ref)

    acc_ref[...] += jnp.dot(adj_ref[...], z_ref[...],
                            preferred_element_type=jnp.float32)

    @pl.when(pl.program_id(1) == pl.num_programs(1) - 1)
    def _():
        h = acc_ref[...] + b_ref[...]            # (TM, Cp) + (1, Cp), f32
        m = jnp.max(h, axis=1, keepdims=True)
        s = h - m
        lse = jnp.log(jnp.sum(jnp.exp(s), axis=1, keepdims=True))
        o_ref[...] = (s - lse).astype(o_ref.dtype)


# ----------------------------- wrapper ---------------------------------------

def sgc_forward(x, weight, bias, edge_index, edge_weight, degree, *,
                tile_m=None, tile_k=None):
    """Plain-JAX glue (gcn_norm + densification) + K-tiled Pallas hot path."""
    n, nfeat = x.shape
    nclass = weight.shape[1]
    c_pad = _round_up(nclass, 128)

    # Tile selection from the VMEM budget; padded node count.
    auto_m, auto_k = _select_tiles(n, c_pad)
    tm = tile_m if tile_m is not None else auto_m
    tk = tile_k if tile_k is not None else auto_k
    assert tm % 16 == 0, "tile_m must be a multiple of 16 (bf16 sublane packing)"
    assert tk % 128 == 0, "tile_k must be a multiple of 128 (lane alignment)"
    n_pad = _round_up(n, math.lcm(tm, tk))
    grid_m, grid_k = n_pad // tm, n_pad // tk

    # gcn_norm (zero-degree nodes masked to 0, as in PyG).
    row, col = edge_index[0], edge_index[1]
    deg = degree.astype(jnp.float32)
    inv_deg = jnp.where(deg > 0,
                        jnp.power(jnp.where(deg > 0, deg, 1.0), -0.5),
                        0.0)
    ew = edge_weight.astype(jnp.float32) * inv_deg[row] * inv_deg[col]

    # Dense normalized adjacency scattered directly into bf16:
    # A[c, r] = sum over edges with (row=r, col=c) of ew, so A @ z matches
    # scatter_add(z[row] * ew, col).
    adj_b = jnp.zeros((n_pad, n_pad), jnp.bfloat16).at[col, row].add(
        ew.astype(jnp.bfloat16))

    # Padded bf16 operands; padded class columns of W are 0, padded bias is
    # -inf-ish so log-softmax ignores them.
    x_b = jnp.pad(x.astype(jnp.bfloat16), ((0, n_pad - n), (0, 0)))
    w_b = jnp.pad(weight.astype(jnp.bfloat16), ((0, 0), (0, c_pad - nclass)))
    b2d = jnp.pad(bias.astype(jnp.float32), (0, c_pad - nclass),
                  constant_values=_NEG_INF).reshape(1, c_pad)

    proj_params = pltpu.CompilerParams(
        dimension_semantics=("parallel",), vmem_limit_bytes=_VMEM_LIMIT)
    prop_params = pltpu.CompilerParams(
        dimension_semantics=("parallel", "arbitrary"),
        vmem_limit_bytes=_VMEM_LIMIT)

    # 1) Feature projection: z0 = x @ W   (row-tiled over N, W resident).
    z0 = pl.pallas_call(
        _project_kernel,
        out_shape=jax.ShapeDtypeStruct((n_pad, c_pad), jnp.bfloat16),
        grid=(grid_m,),
        in_specs=[
            pl.BlockSpec((tm, nfeat), lambda i: (i, 0)),
            pl.BlockSpec((nfeat, c_pad), lambda i: (0, 0)),
        ],
        out_specs=pl.BlockSpec((tm, c_pad), lambda i: (i, 0)),
        compiler_params=proj_params,
        cost_estimate=pl.CostEstimate(
            flops=2 * n_pad * nfeat * c_pad,
            transcendentals=0,
            bytes_accessed=(n_pad * nfeat + nfeat * c_pad + n_pad * c_pad) * 2),
    )(x_b, w_b)

    prop_cost = pl.CostEstimate(
        flops=2 * n_pad * n_pad * c_pad,
        transcendentals=0,
        bytes_accessed=n_pad * n_pad * 2 + 2 * n_pad * c_pad * 2)

    # 2) First propagation: z1 = A @ z0   (A in (tm, tk) blocks, K accumulated).
    z1 = pl.pallas_call(
        _propagate_kernel,
        out_shape=jax.ShapeDtypeStruct((n_pad, c_pad), jnp.bfloat16),
        grid=(grid_m, grid_k),
        in_specs=[
            pl.BlockSpec((tm, tk), lambda i, k: (i, k)),      # A block
            pl.BlockSpec((tk, c_pad), lambda i, k: (k, 0)),   # z0 block
        ],
        out_specs=pl.BlockSpec((tm, c_pad), lambda i, k: (i, 0)),
        scratch_shapes=[pltpu.VMEM((tm, c_pad), jnp.float32)],
        compiler_params=prop_params,
        cost_estimate=prop_cost,
    )(adj_b, z0)

    # 3) Second propagation fused with bias + log_softmax (f32 output).
    out_pad = pl.pallas_call(
        _propagate_lsm_kernel,
        out_shape=jax.ShapeDtypeStruct((n_pad, c_pad), jnp.float32),
        grid=(grid_m, grid_k),
        in_specs=[
            pl.BlockSpec((tm, tk), lambda i, k: (i, k)),      # A block
            pl.BlockSpec((tk, c_pad), lambda i, k: (k, 0)),   # z1 block
            pl.BlockSpec((1, c_pad), lambda i, k: (0, 0)),    # bias (resident)
        ],
        out_specs=pl.BlockSpec((tm, c_pad), lambda i, k: (i, 0)),
        scratch_shapes=[pltpu.VMEM((tm, c_pad), jnp.float32)],
        compiler_params=prop_params,
        cost_estimate=pl.CostEstimate(
            flops=2 * n_pad * n_pad * c_pad,
            transcendentals=n_pad * c_pad,
            bytes_accessed=(n_pad * n_pad * 2 + n_pad * c_pad * 2
                            + c_pad * 4 + n_pad * c_pad * 4)),
    )(adj_b, z1, b2d)

    # Slice away node- and class-padding.
    return out_pad[:n, :nclass]


# ----------------------------- demo / check ----------------------------------

if __name__ == "__main__":
    key = jax.random.PRNGKey(0)

    N = 200        # number of graph nodes (not a tile multiple: exercises padding)
    NFEAT = 32     # input feature dim
    NCLASS = 16    # number of classes
    NUM_RAND_EDGES = 512
    TILE_M = 64    # exercise multi-row-tile path
    TILE_K = 128   # exercise the K-accumulation path (n_pad=256 -> grid_k=2)

    k_x, k_w, k_b, k_r, k_c = jax.random.split(key, 5)

    # Node features.
    x = jax.random.normal(k_x, (N, NFEAT), dtype=jnp.float32)

    # Parameters, init matches reset_parameters(): uniform(-stdv, stdv),
    # stdv = 1/sqrt(nclass).
    stdv = 1.0 / math.sqrt(NCLASS)
    weight = jax.random.uniform(k_w, (NFEAT, NCLASS), minval=-stdv, maxval=stdv,
                                dtype=jnp.float32)
    bias = jax.random.uniform(k_b, (NCLASS,), minval=-stdv, maxval=stdv,
                              dtype=jnp.float32)

    # Synthetic edge list: self-loops for every node plus random edges.
    self_loops = jnp.arange(N, dtype=jnp.int32)
    rand_row = jax.random.randint(k_r, (NUM_RAND_EDGES,), 0, N, dtype=jnp.int32)
    rand_col = jax.random.randint(k_c, (NUM_RAND_EDGES,), 0, N, dtype=jnp.int32)
    row = jnp.concatenate([self_loops, rand_row])
    col = jnp.concatenate([self_loops, rand_col])
    edge_index = jnp.stack([row, col], axis=0)
    edge_weight = jnp.ones((row.shape[0],), dtype=jnp.float32)

    # Node degrees (count appearances as source; self-loops guarantee >= 1).
    degree = jnp.zeros((N,), dtype=jnp.float32).at[row].add(1.0)

    out = sgc_forward(x, weight, bias, edge_index, edge_weight, degree,
                      tile_m=TILE_M, tile_k=TILE_K)
    out = jax.block_until_ready(out)

    # Reference check in plain JAX (full f32, no Pallas). Tolerance is loosened
    # because the kernel's matmul operands are bf16 (f32 accumulation).
    inv_deg = degree ** -0.5
    ew = edge_weight * inv_deg[row] * inv_deg[col]
    z_ref = x @ weight
    for _ in range(2):
        src = z_ref[row] * ew[:, None]
        z_ref = jnp.zeros_like(z_ref).at[col].add(src)
    z_ref = z_ref + bias[None, :]
    ref = jax.nn.log_softmax(z_ref, axis=1)

    assert out.shape == (N, NCLASS)
    assert jnp.allclose(out, ref, atol=5e-2, rtol=5e-2), (
        "max abs diff = %f" % float(jnp.max(jnp.abs(out - ref))))
    print("KERNEL_OK")
</pallas_src>

<mosaic_0001>
module attributes {stable_mosaic.version = 11 : i64} {
  func.func @_project_kernel(%arg0: i32, %arg1: memref<64x32xbf16, #tpu.memory_space<vmem>>, %arg2: memref<32x128xbf16, #tpu.memory_space<vmem>>, %arg3: memref<64x128xbf16, #tpu.memory_space<vmem>>) attributes {dimension_semantics = [#tpu.dimension_semantics<parallel>], iteration_bounds = array<i64: 4>, scalar_prefetch = 0 : i64, scratch_operands = 0 : i64, tpu.core_type = #tpu.core_type<tc>, window_params = [{transform_indices = @transform_0, window_bounds = array<i64: 64, 32>}, {pipeline_mode = #tpu.pipeline_mode<synchronous>, transform_indices = @transform_1, window_bounds = array<i64: 32, 128>}, {transform_indices = @transform_2, window_bounds = array<i64: 64, 128>}]} {
    %c0 = arith.constant 0 : index
    %c0_0 = arith.constant 0 : index
    %0 = vector.load %arg1[%c0, %c0_0] : memref<64x32xbf16, #tpu.memory_space<vmem>>, vector<64x32xbf16>
    %c0_1 = arith.constant 0 : index
    %c0_2 = arith.constant 0 : index
    %1 = vector.load %arg2[%c0_1, %c0_2] : memref<32x128xbf16, #tpu.memory_space<vmem>>, vector<32x128xbf16>
    %cst = arith.constant dense<0.000000e+00> : vector<64x128xf32>
    %2 = tpu.matmul %0, %1, %cst {dimension_numbers = #tpu.dot_dimension_numbers<[1], [0], [0], [1], [0, 0, 1, 1], [], []>} : vector<64x32xbf16>, vector<32x128xbf16>, vector<64x128xf32> -> vector<64x128xf32>
    %3 = arith.truncf %2 : vector<64x128xf32> to vector<64x128xbf16>
    %c0_3 = arith.constant 0 : index
    %c0_4 = arith.constant 0 : index
    %4 = vector.load %arg3[%c0_3, %c0_4] : memref<64x128xbf16, #tpu.memory_space<vmem>>, vector<64x128xbf16>
    tpu.vector_store %arg3[%c0_3, %c0_4], %3 {strides = array<i32>} : memref<64x128xbf16, #tpu.memory_space<vmem>>, vector<64x128xbf16>,
    return
  }
  func.func @transform_0(%arg0: i32) -> (i32, i32) {
    %c0_i32 = arith.constant 0 : i32
    %c0_i32_0 = arith.constant 0 : i32
    return %arg0, %c0_i32 : i32, i32
  }
  func.func @transform_1(%arg0: i32) -> (i32, i32) {
    %c0_i32 = arith.constant 0 : i32
    %c0_i32_0 = arith.constant 0 : i32
    %c0_i32_1 = arith.constant 0 : i32
    return %c0_i32, %c0_i32_0 : i32, i32
  }
  func.func @transform_2(%arg0: i32) -> (i32, i32) {
    %c0_i32 = arith.constant 0 : i32
    %c0_i32_0 = arith.constant 0 : i32
    return %arg0, %c0_i32 : i32, i32
  }
}

</mosaic_0001>

<bundles_post_ra>
// kernel: tpu_custom_call.1
= control target key start
LH: loop header
LB: loop body
LE: loop exit
PB: predicated region body
PF: predicated region fallthrough
CT: control target
= control target key end

     0   :  { %7 = vsyncpa [#allocation3], 0  ;;  %s705_s0 = inlined_call_operand.vmem [shape: bf16[256,32], index: 0, kind: input, shape index: {}]   ;;  %s706_s1 = inlined_call_operand.vmem [shape: bf16[32,128], index: 1, kind: input, shape index: {}]   ;;  %s707_s2 = inlined_call_operand.hbm [shape: bf16[256,128], index: 2, kind: output, shape index: {}]  }
   0x1   :  { %9 = vsyncpa [#allocation3 + $0x1], 0  ;;  %s597_s9 = smov 0   ;;  %s599_s10 = smov 0  }
   0x2   :  { %s601_s11 = smov 0   ;;  %s603_s12 = smov 0  }
   0x3 LB: > { %s618_s13 = sadd.s32 4294967295, %s577_s12   ;;  %s384_s14 = sadd.s32 4294967294, %s577_s12   ;;  %s577_s12 = sphi %s603_s12, %s713_s12   ;;  %s573_s11 = sphi %s601_s11, %s712_s11   ;;  %s569_s10 = sphi %s599_s10, %s711_s10   ;;  %s565_s9 = sphi %s597_s9, %s710_s9  }
   0x4   : > { %s622_s15 = sadd.s32 1, %s577_s12   ;;  %s69_s16 = sadd.s32 1, %s573_s11 }
   0x5   : > { %s66_s17 = ssub.s32 %s577_s12, %s622_s15  ;;  %p79_p0 = scmp.ne.s32.totalorder %s573_s11, %s569_s10 }
   0x6   : > { %p67_p1 = scmp.eq.s32.totalorder %s66_s17, 0  ;;  %p80_p2 = scmp.eq.s32.totalorder %s618_s13, 3 }
   0x7   : > { %p85_p3 = scmp.ne.s32.totalorder %s569_s10, %s565_s9  ;;  %p86_p4 = scmp.eq.s32.totalorder %s384_s14, 3 }
   0x8   : > { %s633_s18 = scalar_select %p67_p1, %s573_s11, %s69_s16  }
   0x9   : > { %p635_p5 = por %p80_p2, %p79_p0  ;;  %p639_p6 = por %p86_p4, %p85_p3 }
   0xa   : > { %p387_p7 = scmp.ge.s32.totalorder %s577_s12, 1  ;;  %p116_p8 = scmp.lt.s32.totalorder %s577_s12, 5 }
   0xc   : > { %p117_p9 = pnand %p387_p7, %p116_p8 }
   0xd   : > { %v509_v0 = vld [vmem:[%s706_s1] sm:$0xff] (!%p117_p9)   ;;  %s389_s23 = sshll.u32 (!%p117_p9), %s618_s13, 3  ;;  %v510_v1 = vld [vmem:[%s706_s1 + $0x8] sm:$0xff] (!%p117_p9)   ;;  %vm190_vm0 = vcmask (!%p117_p9), 261120   ;;  %s135_s30 = sand.u32 (!%p117_p9), 1, %s569_s10  }
   0xe   : > { %120 = sbr.rel (%p117_p9) target bundleno = 258 (0x102), region = 28  ;;  %p139_p10 = scmp.lt.s32.totalorder (!%p117_p9), %s389_s23, 31  ;;  %452 = vmatprep.subr.bf16.mxu0 (!%p117_p9), %v509_v0  ;;  %464 = vmatprep.subr.bf16.mxu1 (!%p117_p9), %v509_v0 }
   0xf   : > { %453 = vmatpush3.bf16.msra.mxu0 (!%p117_p9), %v509_v0  ;;  %466 = vmatpush3.bf16.msra.mxu1 (!%p117_p9), %v509_v0  ;;  %s388_s3 = sshll.u32 (!%p117_p9), %s135_s30, 5  ;;  %s422_s6 = sshll.u32 (!%p117_p9), %s618_s13, 9 }
  0x10   : > { %454 = vmatprep.subr.bf16.mxu0 (!%p117_p9), %v510_v1  ;;  %465 = vmatprep.subr.bf16.mxu1 (!%p117_p9), %v510_v1  ;;  %s137_s4 = scalar_lea.vmem (!%p117_p9), [#allocation2], %s388_s3  ;;  %s662_s14 = scalar_lea.hbm (!%p117_p9), %s707_s2, %s422_s6 }
  0x11   : > { %s322_s5 = sshll.u32 (!%p117_p9), %s137_s4, 4  ;;  %s664_s13 = scalar_lea.sflag (!%p117_p9), [#allocation3], %s135_s30  ;;  %s657_s5 = int_to_ptr.vmem [resolvable:$true] %s322_s5 }
  0x12   : > { %s515_s16 = scalar_lea.vmem (!%p117_p9), %s657_s5, 512  ;;  %s579_s17 = smov (!%p117_p9), [#allocation2]  }
  0x13   : > { %455 = vmatpush3.bf16.msra.mxu0 (!%p117_p9), %v510_v1  ;;  %467 = vmatpush3.bf16.msra.mxu1 (!%p117_p9), %v510_v1  ;;  %p516_p11 = scmp.ne.s32.totalorder (!%p117_p9), %s657_s5, %s515_s16  ;;  %s519_s21 = sshll.u32 (!%p117_p9), %s579_s17, 4  ;;  %s520_s21 = int_to_ptr.vmem [resolvable:$false] %s519_s21 }
  0x14   : > { %s521_s22 = scalar_lea.vmem (!%p117_p9), %s520_s21, 1024  ;;  %p522_p0 = scmp.lt.s32.totalorder (!%p117_p9), %s657_s5, %s520_s21 }
  0x15   : > { %s715_s23 = smov (!%p139_p10, %s389_s23), 31  ;;  %p517_p12 = pnand %p516_p11, %p635_p5 }
  0x16   : > { %s390_s26 = sshll.u32 %s715_s23, 2  ;;  %p523_p1 = scmp.lt.s32.totalorder %s521_s22, %s515_s16 }
  0x17   : > { %s142_s29 = scalar_lea.vmem %s705_s0, %s390_s26  ;;  %p518_p13 = pneg %p517_p12 }
  0x18   : > { %v511_v2 = vld [vmem:[%s142_s29] sm:$0xff]   ;;  %v512_v3 = vld [vmem:[%s142_s29 + $0x10] sm:$0xff]   ;;  %v513_v4 = vld [vmem:[%s142_s29 + $0x8] sm:$0xff]   ;;  %p524_p2 = por %p523_p1, %p522_p0 }
  0x19   : > { %456 = vmatprep.mubr.msk.bf16.mxu0 %vm190_vm0, %v511_v2  ;;  %460 = vmatprep.mubr.msk.bf16.mxu1 %vm190_vm0, %v512_v3  ;;  %v514_v5 = vld [vmem:[%s142_s29 + $0x18] sm:$0xff]  }
  0x1a   : > { %457 = vmatmul.mubr.msk.bf16.vlgmr.msra.gmra.mrb[0].mxu0 %vm190_vm0, %v513_v4  ;;  %461 = vmatmul.mubr.msk.bf16.vlgmr.msra.gmra.mrb[0].mxu1 %vm190_vm0, %v514_v5  ;;  %p525_p3 = pnand %p524_p2, %p518_p13 }
  0xed   : > { %v458_v6 = vpop.f32.mrb[0].mxu0  ;;  %v462_v7 = vpop.f32.mrb[0].mxu1 }
  0xee   : > { %v237_v8 = vpop.f32.mrb[1].mxu0  ;;  %v253_v9 = vpop.f32.mrb[1].mxu1 }
  0xef   : > { %v459_v10 = vpop.f32.mrb[2].mxu0  ;;  %v463_v12 = vpop.f32.mrb[2].mxu1 }
  0xf0   : > { %v431_v11 = vpack.c.bf16 %v459_v10, %v458_v6  ;;  %v240_v13 = vpop.f32.mrb[3].mxu0  ;;  %v441_v14 = vpack.c.bf16 %v463_v12, %v462_v7  ;;  %v256_v16 = vpop.f32.mrb[3].mxu1 }
  0xf1   : > { %v426_v15 = vpack.c.bf16 %v240_v13, %v237_v8  ;;  %v436_v17 = vpack.c.bf16 %v256_v16, %v253_v9 }
  0xf2   : > { %443 = vst [vmem:[%s137_s4 + $0x8] sm:$0xff] %v431_v11   ;;  %445 = vst [vmem:[%s137_s4 + $0x18] sm:$0xff] %v441_v14  }
  0xf3   : > { %427 = vst [vmem:[%s137_s4] sm:$0xff] %v426_v15   ;;  %444 = vst [vmem:[%s137_s4 + $0x10] sm:$0xff] %v436_v17  }
  0xf4   : > { %528 = shalt.err (!%p525_p3)
}
  0xf5   : > { %s529_s23 = scalar_lea.hbm %s662_s14, 512  ;;  %s533_s26 = scalar_lea.hbm %s707_s2, 2048 }
  0xf6   : > { %p530_p4 = scmp.ne.s32.totalorder %s662_s14, %s529_s23  ;;  %p534_p9 = scmp.lt.u32.totalorder %s662_s14, %s707_s2 }
  0xf7   : > { %p535_p10 = scmp.lt.u32.totalorder %s533_s26, %s529_s23  ;;  %p537_p12 = scmp.lt.u32.totalorder %s529_s23, %s662_s14 }
  0xf8   : > { %p531_p7 = pnand %p530_p4, %p635_p5 }
  0xf9   : > { %p536_p11 = por %p535_p10, %p534_p9 }
  0xfa   : > { %p532_p8 = pneg %p531_p7 }
  0xfb   : > { %p538_p13 = por %p537_p12, %p536_p11 }
  0xfd   : > { %p539_p0 = pnand %p538_p13, %p532_p8 }
  0xff   : > { %542 = shalt.err (!%p539_p0)
}
 0x100   : > { %s580_s29 = smov 64   ;;  %s581_s30 = smov 4  }
 0x101   : > { %468 = dma.vmem_to_hbm [thread:$0]  (%p635_p5), %s657_s5, 512, %s662_s14, %s664_s13, %s580_s29, %s580_s29, %s581_s30  }
 0x102 PF: > { %p474_p1 = scmp.ge.s32.totalorder %s577_s12, 2  ;;  %s337_s3 = sand.u32 1, %s565_s9  }
 0x103   : > { %s338_s4 = scalar_lea.sflag [#allocation3], %s337_s3 }
 0x104   : > { %p471_p2 = pnand %p474_p1, %p639_p6 }
 0x106   : > { %560 = dma.done.wait (!%p471_p2), %s338_s4, 512  }
 0x107   : > { %562 = vsyncadd (!%p471_p2), %s338_s4, 4294966784  ;;  %p12_p3 = scmp.ge.s32.totalorder %s622_s15, 6   ;;  %s710_s9 = smov %s569_s10 }
 0x108   : > { %s711_s10 = smov %s573_s11  ;;  %s712_s11 = smov %s633_s18 }
 0x109   : > { %s713_s12 = smov %s622_s15  ;;  %14 = sbr.rel (!%p12_p3) target bundleno = 3 (0x3), region = 63 }
 0x110   :  { %343 = vsyncpa [#allocation3], 1 }
 0x111   :  { %345 = vsyncpa [#allocation3 + $0x1], 1 }

</bundles_post_ra>
